<compile_context>
chip_gen: v7x
topology: tpu7x:2x2x1
jax: 0.10.0
libtpu: 0.0.40
codegen_flags: <defaults>
</compile_context>

<pallas_src>
import jax
import jax.numpy as jnp
from jax.experimental import pallas as pl
from jax.experimental.pallas import tpu as pltpu

SUBLANE = 8


def _round_up(x, m):
    return ((x + m - 1) // m) * m


# ----------------------------------------------------------------------------
# Kernel
# ----------------------------------------------------------------------------
def fused_mlp_kernel(x_ref, w_ref, b_ref, o_ref):
    # One MXU matmul per batch tile; f32 accumulation, f32 bias add (VPU),
    # single cast on store. Weight/bias blocks are VMEM-resident (constant
    # index_map); only x/out tiles stream through HBM<->VMEM DMA.
    x = x_ref[...].astype(w_ref.dtype)                       # bf16 feed to MXU
    y = jnp.dot(x, w_ref[...], preferred_element_type=jnp.float32)
    o_ref[...] = (y + b_ref[...]).astype(o_ref.dtype)


# ----------------------------------------------------------------------------
# Parameter fusion (wrapper-side, exact because forward() has no nonlinearity)
# ----------------------------------------------------------------------------
def fuse_params(params, compute_dtype=jnp.bfloat16):
    """Fold the three Linear layers into one affine map.

    Returns (W, b):
      W: (d_in, d_out) in `compute_dtype`
      b: (1, d_out) f32
    """
    w1, b1, w3, b3, w4, b4 = [jnp.asarray(p, jnp.float32) for p in params]
    w_fused = w1 @ w3 @ w4                       # (d_in, d_out)
    b_fused = b1 @ w3 @ w4 + b3 @ w4 + b4        # (1, d_out)
    return w_fused.astype(compute_dtype), b_fused.astype(jnp.float32)


# ----------------------------------------------------------------------------
# Tiling / VMEM sizing
# ----------------------------------------------------------------------------
def _vmem_budget_bytes():
    """~75% of physical VMEM (v7x: ~48 MiB, v5e/v6e: ~96 MiB)."""
    try:
        cap = pltpu.get_tpu_info().vmem_capacity_bytes
    except Exception:
        cap = 64 << 20                           # conservative fallback (v7x)
    return int(cap * 3 // 4)


def _choose_batch_tiling(B, per_row_bytes, vmem_budget, max_tb,
                         megacore_split_rows=4096):
    """Pick (tb, b_pad) for the batch axis.

    Preference order: (1) single full-extent block (no pad, no masking),
    split in two for v7x megacore when the batch is large; (2) a multiple of
    8 near the VMEM-derived cap that divides B exactly (no pad); (3) fallback
    to minimal padding with tb = cap.
    """
    tb_cap = max(SUBLANE, min(int(max_tb), vmem_budget // max(int(per_row_bytes), 1)))
    tb_cap = (tb_cap // SUBLANE) * SUBLANE

    if B <= tb_cap:
        # Whole batch in one tile. For large batches split into two tiles so
        # both v7x TensorCores get work (harmless on single-TC v5e/v6e).
        if B >= megacore_split_rows and B % (2 * SUBLANE) == 0:
            return B // 2, B
        return B, B                              # full-extent block: any B ok

    # Look for a divisor of B that is a multiple of 8, no smaller than half
    # the VMEM-derived cap (a slightly smaller tile is fine, a tiny one isn't).
    tb = tb_cap
    while tb >= SUBLANE and 2 * tb >= tb_cap:
        if B % tb == 0:
            return tb, B
        tb -= SUBLANE

    # Rare fallback: pad the batch up to a multiple of the cap-sized tile.
    return tb_cap, _round_up(B, tb_cap)


# ----------------------------------------------------------------------------
# Forward wrapper
# ----------------------------------------------------------------------------
def mlp_forward(x, fused_params, *, out_dtype=None, max_block_batch=32768):
    """y = x @ W + b via a batch-tiled, weight-resident Pallas streaming GEMM."""
    w, b = fused_params
    if b.ndim == 1:
        b = b[None, :]
    B, d_in = x.shape
    d_out = w.shape[1]
    out_dtype = x.dtype if out_dtype is None else jnp.dtype(out_dtype)
    out_itemsize = jnp.dtype(out_dtype).itemsize

    # Per-row VMEM bytes: double-buffered x/out tiles + f32 matmul result.
    per_row = (2 * d_in * x.dtype.itemsize
               + 2 * d_out * out_itemsize
               + d_out * 4)
    vmem_budget = _vmem_budget_bytes()
    tb, b_pad = _choose_batch_tiling(B, per_row, vmem_budget, max_block_batch)

    if b_pad != B:                               # rare fallback path only
        x = jnp.pad(x, ((0, b_pad - B), (0, 0)))

    grid = (b_pad // tb,)

    # Explicit VMEM limit: actual double-buffered tiles + resident weight/bias,
    # with 2x headroom, never above the 75%-of-physical budget.
    tile_bytes = (per_row * tb
                  + d_in * d_out * w.dtype.itemsize
                  + d_out * 4)
    vmem_limit = int(min(max(2 * tile_bytes, 8 << 20), vmem_budget))

    # Advisory cost estimate for XLA scheduling around this mem-bound call.
    cost = pl.CostEstimate(
        flops=2 * b_pad * d_in * d_out,
        transcendentals=0,
        bytes_accessed=(b_pad * d_in * x.dtype.itemsize
                        + b_pad * d_out * out_itemsize
                        + d_in * d_out * w.dtype.itemsize
                        + d_out * 4),
    )

    out = pl.pallas_call(
        fused_mlp_kernel,
        out_shape=jax.ShapeDtypeStruct((b_pad, d_out), out_dtype),
        grid=grid,
        in_specs=[
            pl.BlockSpec((tb, d_in), lambda i: (i, 0)),      # streamed x tile
            pl.BlockSpec((d_in, d_out), lambda i: (0, 0)),   # resident weight
            pl.BlockSpec((1, d_out), lambda i: (0, 0)),      # resident bias
        ],
        out_specs=pl.BlockSpec((tb, d_out), lambda i: (i, 0)),
        compiler_params=pltpu.CompilerParams(
            dimension_semantics=("parallel",),   # megacore-shard batch on v7x
            vmem_limit_bytes=vmem_limit,
        ),
        cost_estimate=cost,
    )(x, w, b)

    if b_pad != B:
        out = out[:B]
    return out


# ----------------------------------------------------------------------------
# Synthetic parameters + reference
# ----------------------------------------------------------------------------
def init_params(key, input_shape, hidden=32):
    """Deterministic synthetic parameters matching the PyTorch module shapes.

    PyTorch stores Linear weights as (out, in); we store the transpose
    (in, out). layer3's weight is parametrized to be orthogonal -> build an
    orthogonal 32x32 matrix via QR (only the resulting orthogonal weight
    matters for the forward pass).
    """
    k1, k2, k3, k4, k5, k6 = jax.random.split(key, 6)
    w1 = jax.random.normal(k1, (input_shape, hidden), jnp.float32) * 0.1
    b1 = jax.random.normal(k2, (1, hidden), jnp.float32) * 0.1
    q, r = jnp.linalg.qr(jax.random.normal(k3, (hidden, hidden), jnp.float32))
    w3 = (q * jnp.sign(jnp.diag(r))[None, :]).T.astype(jnp.float32)
    b3 = jax.random.normal(k4, (1, hidden), jnp.float32) * 0.1
    w4 = jax.random.normal(k5, (hidden, input_shape), jnp.float32) * 0.1
    b4 = jax.random.normal(k6, (1, input_shape), jnp.float32) * 0.1
    return (w1, b1, w3, b3, w4, b4)


def mlp_reference(x, params):
    w1, b1, w3, b3, w4, b4 = params
    h1 = x @ w1 + b1
    h2 = h1 @ w3 + b3
    return h2 @ w4 + b4


if __name__ == "__main__":
    key = jax.random.PRNGKey(0)
    kx, kp = jax.random.split(key)

    batch, input_shape = 200, 16     # hidden=32 (output_shape must be 32)
    x = jax.random.normal(kx, (batch, input_shape), jnp.float32)
    params = init_params(kp, input_shape)
    fused = fuse_params(params, compute_dtype=jnp.bfloat16)

    # Reference 1: same math as the kernel (bf16 MXU inputs, f32 accumulation).
    w_f, b_f = fused
    ref_matched = (
        jnp.dot(x.astype(jnp.bfloat16), w_f, preferred_element_type=jnp.float32)
        + b_f
    ).astype(x.dtype)
    # Reference 2: the original unfused three-layer forward in f32.
    ref_f32 = mlp_reference(x, params)

    # Config 1: performance defaults -> single full-extent batch tile,
    # no padding, no output lane padding, no wrapper slices.
    out1 = jax.block_until_ready(mlp_forward(x, fused))
    # Config 2: force a small tile cap -> multi-step batch grid; the tile is
    # snapped to a divisor of B (tb=40, grid=(5,)) so there is still no pad.
    out2 = jax.block_until_ready(mlp_forward(x, fused, max_block_batch=64))
    # Config 3: awkward batch + tiny cap -> exercises the padding fallback.
    x3 = x[:37]
    out3 = jax.block_until_ready(mlp_forward(x3, fused, max_block_batch=16))

    for out in (out1, out2):
        assert out.shape == (batch, input_shape), out.shape
        assert jnp.allclose(out, ref_matched, atol=1e-4, rtol=1e-4), \
            "mismatch vs bf16-matched fused reference"
        assert jnp.allclose(out, ref_f32, atol=3e-2, rtol=3e-2), \
            "mismatch vs f32 three-layer reference"
    assert out3.shape == (37, input_shape), out3.shape
    assert jnp.allclose(out3, ref_matched[:37], atol=1e-4, rtol=1e-4), \
        "mismatch on padded-fallback path"
    print("KERNEL_OK")
</pallas_src>

<mosaic_0001>
module attributes {stable_mosaic.version = 11 : i64} {
  func.func @fused_mlp_kernel(%arg0: i32, %arg1: memref<200x16xf32, #tpu.memory_space<vmem>>, %arg2: memref<16x16xbf16, #tpu.memory_space<vmem>>, %arg3: memref<1x16xf32, #tpu.memory_space<vmem>>, %arg4: memref<200x16xf32, #tpu.memory_space<vmem>>) attributes {dimension_semantics = [#tpu.dimension_semantics<parallel>], iteration_bounds = array<i64: 1>, scalar_prefetch = 0 : i64, scratch_operands = 0 : i64, tpu.core_type = #tpu.core_type<tc>, window_params = [{transform_indices = @transform_0, window_bounds = array<i64: 200, 16>}, {pipeline_mode = #tpu.pipeline_mode<synchronous>, transform_indices = @transform_1, window_bounds = array<i64: 16, 16>}, {pipeline_mode = #tpu.pipeline_mode<synchronous>, transform_indices = @transform_2, window_bounds = array<i64: 1, 16>}, {transform_indices = @transform_3, window_bounds = array<i64: 200, 16>}]} {
    %c0 = arith.constant 0 : index
    %c0_0 = arith.constant 0 : index
    %0 = vector.load %arg1[%c0, %c0_0] : memref<200x16xf32, #tpu.memory_space<vmem>>, vector<200x16xf32>
    %1 = arith.truncf %0 : vector<200x16xf32> to vector<200x16xbf16>
    %c0_1 = arith.constant 0 : index
    %c0_2 = arith.constant 0 : index
    %2 = vector.load %arg2[%c0_1, %c0_2] : memref<16x16xbf16, #tpu.memory_space<vmem>>, vector<16x16xbf16>
    %cst = arith.constant dense<0.000000e+00> : vector<200x16xf32>
    %3 = tpu.matmul %1, %2, %cst {dimension_numbers = #tpu.dot_dimension_numbers<[1], [0], [0], [1], [0, 0, 1, 1], [], []>} : vector<200x16xbf16>, vector<16x16xbf16>, vector<200x16xf32> -> vector<200x16xf32>
    %c0_3 = arith.constant 0 : index
    %c0_4 = arith.constant 0 : index
    %4 = vector.load %arg3[%c0_3, %c0_4] : memref<1x16xf32, #tpu.memory_space<vmem>>, vector<1x16xf32>
    %5 = vector.broadcast %4 : vector<1x16xf32> to vector<200x16xf32>
    %6 = arith.addf %3, %5 : vector<200x16xf32>
    %c0_5 = arith.constant 0 : index
    %c0_6 = arith.constant 0 : index
    %7 = vector.load %arg4[%c0_5, %c0_6] : memref<200x16xf32, #tpu.memory_space<vmem>>, vector<200x16xf32>
    tpu.vector_store %arg4[%c0_5, %c0_6], %6 {strides = array<i32>} : memref<200x16xf32, #tpu.memory_space<vmem>>, vector<200x16xf32>,
    return
  }
  func.func @transform_0(%arg0: i32) -> (i32, i32) {
    %c0_i32 = arith.constant 0 : i32
    %c0_i32_0 = arith.constant 0 : i32
    return %arg0, %c0_i32 : i32, i32
  }
  func.func @transform_1(%arg0: i32) -> (i32, i32) {
    %c0_i32 = arith.constant 0 : i32
    %c0_i32_0 = arith.constant 0 : i32
    %c0_i32_1 = arith.constant 0 : i32
    return %c0_i32, %c0_i32_0 : i32, i32
  }
  func.func @transform_2(%arg0: i32) -> (i32, i32) {
    %c0_i32 = arith.constant 0 : i32
    %c0_i32_0 = arith.constant 0 : i32
    %c0_i32_1 = arith.constant 0 : i32
    return %c0_i32, %c0_i32_0 : i32, i32
  }
  func.func @transform_3(%arg0: i32) -> (i32, i32) {
    %c0_i32 = arith.constant 0 : i32
    %c0_i32_0 = arith.constant 0 : i32
    return %arg0, %c0_i32 : i32, i32
  }
}

</mosaic_0001>

<bundles_post_ra>
// kernel: tpu_custom_call.1
= control target key start
LH: loop header
LB: loop body
LE: loop exit
PB: predicated region body
PF: predicated region fallthrough
CT: control target
= control target key end

     0   :  { %v361_v0 = vmov 0.0   ;;  %vm362_vm0 = vmmov 0   ;;  %vm68_vm1 = vcmask 130048   ;;  %s632_s1 = inlined_call_operand.vmem [shape: bf16[16,16], index: 1, kind: input, shape index: {}]   ;;  %s633_s0 = inlined_call_operand.vmem [shape: f32[200,16], index: 0, kind: input, shape index: {}]   ;;  %s634_s2 = inlined_call_operand.vmem [shape: f32[1,16], index: 2, kind: input, shape index: {}]   ;;  %s635_s3 = inlined_call_operand.vmem [shape: f32[200,16], index: 3, kind: output, shape index: {}]  }
   0x1   :  { %302 = vmatprep.subr.bf16.mxu0 %v361_v0  ;;  %v360_v1 = vld [vmem:[%s632_s1] sm:$0xff]   ;;  %304 = vmatprep.mubr.msk.bf16.mxu0 %vm362_vm0, %v361_v0  ;;  %v16_v3 = vld [vmem:[%s633_s0 + $0x8] sm:$0xff]  ;;  %v29_v4 = vld [vmem:[%s633_s0 + $0x70] sm:$0xff] }
   0x2   :  { %v15_v2 = vld [vmem:[%s633_s0] sm:$0xff]  ;;  %356 = vmatprep.subr.bf16.mxu1 %v361_v0  ;;  %332 = vmatprep.mubr.msk.bf16.mxu1 %vm362_vm0, %v361_v0  ;;  %v30_v6 = vld [vmem:[%s633_s0 + $0x78] sm:$0xff]  ;;  %v17_v8 = vld [vmem:[%s633_s0 + $0x10] sm:$0xff] }
   0x3   :  { %303 = vmatpush3.bf16.msra.mxu0 %v360_v1  ;;  %v40_v5 = vpack.c.bf16 %v16_v3, %v15_v2  ;;  %357 = vmatpush3.bf16.msra.mxu1 %v360_v1  ;;  %v47_v7 = vpack.c.bf16 %v30_v6, %v29_v4  ;;  %v18_v9 = vld [vmem:[%s633_s0 + $0x18] sm:$0xff]  ;;  %v31_v10 = vld [vmem:[%s633_s0 + $0x80] sm:$0xff]  ;;  %v32_v11 = vld [vmem:[%s633_s0 + $0x88] sm:$0xff] }
   0x4   :  { %v41_v12 = vpack.c.bf16 %v18_v9, %v17_v8  ;;  %v48_v13 = vpack.c.bf16 %v32_v11, %v31_v10  ;;  %v19_v14 = vld [vmem:[%s633_s0 + $0x20] sm:$0xff]  ;;  %v20_v15 = vld [vmem:[%s633_s0 + $0x28] sm:$0xff]  ;;  %v33_v16 = vld [vmem:[%s633_s0 + $0x90] sm:$0xff] }
   0x5   :  { %v34_v17 = vld [vmem:[%s633_s0 + $0x98] sm:$0xff]  ;;  %v42_v18 = vpack.c.bf16 %v20_v15, %v19_v14  ;;  %v21_v20 = vld [vmem:[%s633_s0 + $0x30] sm:$0xff]  ;;  %v35_v22 = vld [vmem:[%s633_s0 + $0xa0] sm:$0xff] }
   0x6   :  { %305 = vmatmul.mubr.msk.bf16.vlgmr.msra.gmra.mrb[0].mxu0 %vm68_vm1, %v40_v5  ;;  %333 = vmatmul.mubr.msk.bf16.vlgmr.msra.gmra.mrb[0].mxu1 %vm68_vm1, %v47_v7  ;;  %v49_v19 = vpack.c.bf16 %v34_v17, %v33_v16  ;;  %v22_v21 = vld [vmem:[%s633_s0 + $0x38] sm:$0xff]  ;;  %v36_v23 = vld [vmem:[%s633_s0 + $0xa8] sm:$0xff]  ;;  %v23_v26 = vld [vmem:[%s633_s0 + $0x40] sm:$0xff] }
   0x7   :  { %308 = vmatprep.mubr.msk.bf16.mxu0 %vm362_vm0, %v361_v0  ;;  %336 = vmatprep.mubr.msk.bf16.mxu1 %vm362_vm0, %v361_v0  ;;  %v43_v24 = vpack.c.bf16 %v22_v21, %v21_v20  ;;  %v50_v25 = vpack.c.bf16 %v36_v23, %v35_v22  ;;  %v24_v27 = vld [vmem:[%s633_s0 + $0x48] sm:$0xff]  ;;  %v37_v28 = vld [vmem:[%s633_s0 + $0xb0] sm:$0xff]  ;;  %v38_v29 = vld [vmem:[%s633_s0 + $0xb8] sm:$0xff] }
   0x8   :  { %v44_v30 = vpack.c.bf16 %v24_v27, %v23_v26  ;;  %v51_v31 = vpack.c.bf16 %v38_v29, %v37_v28  ;;  %v25_v32 = vld [vmem:[%s633_s0 + $0x50] sm:$0xff]  ;;  %v26_v33 = vld [vmem:[%s633_s0 + $0x58] sm:$0xff]  ;;  %v39_v34 = vld [vmem:[%s633_s0 + $0xc0] sm:$0xff] }
   0x9   :  { %v45_v35 = vpack.c.bf16 %v26_v33, %v25_v32  ;;  %v52_v36 = vpack.c.bf16 %v39_v34, %v39_v34  ;;  %v27_v37 = vld [vmem:[%s633_s0 + $0x60] sm:$0xff]  ;;  %v28_v38 = vld [vmem:[%s633_s0 + $0x68] sm:$0xff] }
   0xa   :  { %v46_v39 = vpack.c.bf16 %v28_v38, %v27_v37  ;;  %v505_v40 = vld [vmem:[%s634_s2] ss:$0 sm:$0xff] }
   0xe   :  { %309 = vmatmul.mubr.msk.bf16.gmra.mrb[4].mxu0 %vm68_vm1, %v41_v12  ;;  %337 = vmatmul.mubr.msk.bf16.gmra.mrb[4].mxu1 %vm68_vm1, %v48_v13 }
   0xf   :  { %312 = vmatprep.mubr.msk.bf16.mxu0 %vm362_vm0, %v361_v0  ;;  %340 = vmatprep.mubr.msk.bf16.mxu1 %vm362_vm0, %v361_v0 }
  0x16   :  { %313 = vmatmul.mubr.msk.bf16.gmra.mrb[8].mxu0 %vm68_vm1, %v42_v18  ;;  %341 = vmatmul.mubr.msk.bf16.gmra.mrb[8].mxu1 %vm68_vm1, %v49_v19 }
  0x17   :  { %316 = vmatprep.mubr.msk.bf16.mxu0 %vm362_vm0, %v361_v0  ;;  %344 = vmatprep.mubr.msk.bf16.mxu1 %vm362_vm0, %v361_v0 }
  0x1e   :  { %317 = vmatmul.mubr.msk.bf16.gmra.mrb[12].mxu0 %vm68_vm1, %v43_v24  ;;  %345 = vmatmul.mubr.msk.bf16.gmra.mrb[12].mxu1 %vm68_vm1, %v50_v25 }
  0x1f   :  { %320 = vmatprep.mubr.msk.bf16.mxu0 %vm362_vm0, %v361_v0  ;;  %348 = vmatprep.mubr.msk.bf16.mxu1 %vm362_vm0, %v361_v0 }
  0x26   :  { %321 = vmatmul.mubr.msk.bf16.gmra.mrb[16].mxu0 %vm68_vm1, %v44_v30  ;;  %349 = vmatmul.mubr.msk.bf16.gmra.mrb[16].mxu1 %vm68_vm1, %v51_v31 }
  0x27   :  { %324 = vmatprep.mubr.msk.bf16.mxu0 %vm362_vm0, %v361_v0  ;;  %352 = vmatprep.mubr.msk.bf16.mxu1 %vm362_vm0, %v361_v0 }
  0x2e   :  { %325 = vmatmul.mubr.msk.bf16.gmra.mrb[20].mxu0 %vm68_vm1, %v45_v35  ;;  %353 = vmatmul.mubr.msk.bf16.gmra.mrb[20].mxu1 %vm68_vm1, %v52_v36 }
  0x2f   :  { %328 = vmatprep.mubr.msk.bf16.mxu0 %vm362_vm0, %v361_v0 }
  0x36   :  { %329 = vmatmul.mubr.msk.bf16.gmra.mrb[24].mxu0 %vm68_vm1, %v46_v39 }
  0xd9   :  { %v142_v41 = vpop.f32.mrb[0].mxu0  ;;  %v198_v42 = vpop.f32.mrb[0].mxu1 }
  0xda   :  { %v143_v43 = vadd.f32 %v505_v40, %v142_v41  ;;  %v306_v44 = vpop.f32.mrb[1].mxu0  ;;  %v199_v45 = vadd.f32 %v505_v40, %v198_v42  ;;  %v334_v46 = vpop.f32.mrb[1].mxu1 }
  0xdb   :  { %v145_v47 = vpop.f32.mrb[2].mxu0  ;;  %v201_v48 = vpop.f32.mrb[2].mxu1 }
  0xdc   :  { %244 = vst.msk [vmem:[%s635_s3] sm:$0xff] %vm68_vm1, %v143_v43  ;;  %v146_v49 = vadd.f32 %v505_v40, %v145_v47  ;;  %v307_v50 = vpop.f32.mrb[3].mxu0  ;;  %258 = vst.msk [vmem:[%s635_s3 + $0x70] sm:$0xff] %vm68_vm1, %v199_v45  ;;  %v202_v51 = vadd.f32 %v505_v40, %v201_v48  ;;  %v335_v52 = vpop.f32.mrb[3].mxu1 }
  0xde   :  { %245 = vst.msk [vmem:[%s635_s3 + $0x8] sm:$0xff] %vm68_vm1, %v146_v49  ;;  %259 = vst.msk [vmem:[%s635_s3 + $0x78] sm:$0xff] %vm68_vm1, %v202_v51 }
  0xe1   :  { %v150_v53 = vpop.f32.mrb[4].mxu0  ;;  %v206_v54 = vpop.f32.mrb[4].mxu1 }
  0xe2   :  { %v151_v55 = vadd.f32 %v505_v40, %v150_v53  ;;  %v310_v56 = vpop.f32.mrb[5].mxu0  ;;  %v207_v57 = vadd.f32 %v505_v40, %v206_v54  ;;  %v338_v58 = vpop.f32.mrb[5].mxu1 }
  0xe3   :  { %v153_v59 = vpop.f32.mrb[6].mxu0  ;;  %v209_v60 = vpop.f32.mrb[6].mxu1 }
  0xe4   :  { %246 = vst.msk [vmem:[%s635_s3 + $0x10] sm:$0xff] %vm68_vm1, %v151_v55  ;;  %v154_v61 = vadd.f32 %v505_v40, %v153_v59  ;;  %v311_v62 = vpop.f32.mrb[7].mxu0  ;;  %260 = vst.msk [vmem:[%s635_s3 + $0x80] sm:$0xff] %vm68_vm1, %v207_v57  ;;  %v210_v63 = vadd.f32 %v505_v40, %v209_v60  ;;  %v339_v0 = vpop.f32.mrb[7].mxu1 }
  0xe6   :  { %247 = vst.msk [vmem:[%s635_s3 + $0x18] sm:$0xff] %vm68_vm1, %v154_v61  ;;  %261 = vst.msk [vmem:[%s635_s3 + $0x88] sm:$0xff] %vm68_vm1, %v210_v63 }
  0xe9   :  { %v158_v1 = vpop.f32.mrb[8].mxu0  ;;  %v214_v2 = vpop.f32.mrb[8].mxu1 }
  0xea   :  { %v159_v3 = vadd.f32 %v505_v40, %v158_v1  ;;  %v314_v4 = vpop.f32.mrb[9].mxu0  ;;  %v215_v5 = vadd.f32 %v505_v40, %v214_v2  ;;  %v342_v6 = vpop.f32.mrb[9].mxu1 }
  0xeb   :  { %v161_v7 = vpop.f32.mrb[10].mxu0  ;;  %v217_v8 = vpop.f32.mrb[10].mxu1 }
  0xec   :  { %248 = vst.msk [vmem:[%s635_s3 + $0x20] sm:$0xff] %vm68_vm1, %v159_v3  ;;  %v162_v9 = vadd.f32 %v505_v40, %v161_v7  ;;  %v315_v10 = vpop.f32.mrb[11].mxu0  ;;  %262 = vst.msk [vmem:[%s635_s3 + $0x90] sm:$0xff] %vm68_vm1, %v215_v5  ;;  %v218_v11 = vadd.f32 %v505_v40, %v217_v8  ;;  %v343_v12 = vpop.f32.mrb[11].mxu1 }
  0xee   :  { %249 = vst.msk [vmem:[%s635_s3 + $0x28] sm:$0xff] %vm68_vm1, %v162_v9  ;;  %263 = vst.msk [vmem:[%s635_s3 + $0x98] sm:$0xff] %vm68_vm1, %v218_v11 }
  0xf1   :  { %v166_v13 = vpop.f32.mrb[12].mxu0  ;;  %v222_v14 = vpop.f32.mrb[12].mxu1 }
  0xf2   :  { %v167_v15 = vadd.f32 %v505_v40, %v166_v13  ;;  %v318_v16 = vpop.f32.mrb[13].mxu0  ;;  %v223_v17 = vadd.f32 %v505_v40, %v222_v14  ;;  %v346_v18 = vpop.f32.mrb[13].mxu1 }
  0xf3   :  { %v169_v19 = vpop.f32.mrb[14].mxu0  ;;  %v225_v20 = vpop.f32.mrb[14].mxu1 }
  0xf4   :  { %250 = vst.msk [vmem:[%s635_s3 + $0x30] sm:$0xff] %vm68_vm1, %v167_v15  ;;  %v170_v21 = vadd.f32 %v505_v40, %v169_v19  ;;  %v319_v22 = vpop.f32.mrb[15].mxu0  ;;  %264 = vst.msk [vmem:[%s635_s3 + $0xa0] sm:$0xff] %vm68_vm1, %v223_v17  ;;  %v226_v23 = vadd.f32 %v505_v40, %v225_v20  ;;  %v347_v24 = vpop.f32.mrb[15].mxu1 }
  0xf6   :  { %251 = vst.msk [vmem:[%s635_s3 + $0x38] sm:$0xff] %vm68_vm1, %v170_v21  ;;  %265 = vst.msk [vmem:[%s635_s3 + $0xa8] sm:$0xff] %vm68_vm1, %v226_v23 }
  0xf9   :  { %v174_v25 = vpop.f32.mrb[16].mxu0  ;;  %v230_v26 = vpop.f32.mrb[16].mxu1 }
  0xfa   :  { %v175_v27 = vadd.f32 %v505_v40, %v174_v25  ;;  %v322_v28 = vpop.f32.mrb[17].mxu0  ;;  %v231_v29 = vadd.f32 %v505_v40, %v230_v26  ;;  %v350_v30 = vpop.f32.mrb[17].mxu1 }
  0xfb   :  { %v177_v31 = vpop.f32.mrb[18].mxu0  ;;  %v233_v32 = vpop.f32.mrb[18].mxu1 }
  0xfc   :  { %252 = vst.msk [vmem:[%s635_s3 + $0x40] sm:$0xff] %vm68_vm1, %v175_v27  ;;  %v178_v33 = vadd.f32 %v505_v40, %v177_v31  ;;  %v323_v34 = vpop.f32.mrb[19].mxu0  ;;  %266 = vst.msk [vmem:[%s635_s3 + $0xb0] sm:$0xff] %vm68_vm1, %v231_v29  ;;  %v234_v35 = vadd.f32 %v505_v40, %v233_v32  ;;  %v351_v36 = vpop.f32.mrb[19].mxu1 }
  0xfe   :  { %253 = vst.msk [vmem:[%s635_s3 + $0x48] sm:$0xff] %vm68_vm1, %v178_v33  ;;  %267 = vst.msk [vmem:[%s635_s3 + $0xb8] sm:$0xff] %vm68_vm1, %v234_v35 }
 0x101   :  { %v182_v37 = vpop.f32.mrb[20].mxu0  ;;  %v238_v38 = vpop.f32.mrb[20].mxu1 }
 0x102   :  { %v183_v39 = vadd.f32 %v505_v40, %v182_v37  ;;  %v326_v41 = vpop.f32.mrb[21].mxu0  ;;  %v239_v42 = vadd.f32 %v505_v40, %v238_v38  ;;  %v354_v43 = vpop.f32.mrb[21].mxu1 }
 0x103   :  { %v185_v44 = vpop.f32.mrb[22].mxu0  ;;  %v241_v45 = vpop.f32.mrb[22].mxu1 }
 0x104   :  { %254 = vst.msk [vmem:[%s635_s3 + $0x50] sm:$0xff] %vm68_vm1, %v183_v39  ;;  %v186_v46 = vadd.f32 %v505_v40, %v185_v44  ;;  %v327_v47 = vpop.f32.mrb[23].mxu0  ;;  %268 = vst.msk [vmem:[%s635_s3 + $0xc0] sm:$0xff] %vm68_vm1, %v239_v42  ;;  %v355_v48 = vpop.f32.mrb[23].mxu1 }
 0x106   :  { %255 = vst.msk [vmem:[%s635_s3 + $0x58] sm:$0xff] %vm68_vm1, %v186_v46 }
 0x109   :  { %v190_v49 = vpop.f32.mrb[24].mxu0 }
 0x10a   :  { %v191_v50 = vadd.f32 %v505_v40, %v190_v49  ;;  %v330_v51 = vpop.f32.mrb[25].mxu0 }
 0x10b   :  { %v193_v52 = vpop.f32.mrb[26].mxu0 }
 0x10c   :  { %256 = vst.msk [vmem:[%s635_s3 + $0x60] sm:$0xff] %vm68_vm1, %v191_v50  ;;  %v194_v53 = vadd.f32 %v505_v40, %v193_v52  ;;  %v331_v54 = vpop.f32.mrb[27].mxu0 }
 0x10e   :  { %257 = vst.msk [vmem:[%s635_s3 + $0x68] sm:$0xff] %vm68_vm1, %v194_v53 }

</bundles_post_ra>
